<compile_context>
chip_gen: v7x
topology: tpu7x:2x2x1
jax: 0.10.0
libtpu: 0.0.40
codegen_flags: <defaults>
</compile_context>

<pallas_src>
import functools
import math

import jax
import jax.numpy as jnp
from jax.experimental import pallas as pl
from jax.experimental.pallas import tpu as pltpu

# Hyper-parameters of the module (match the PyTorch defaults).
LV_LATENT_DIM = 1
LV_PRIOR_MU = 0.0
LV_PRIOR_STD = 5.0
LV_INIT_STD = 1.0
INIT_SCALING = 0.1


def _round_up(n, m):
    return ((n + m - 1) // m) * m


def _lv_kernel(slab_ref, w1aug_ref, w2T_ref, b2_ref, out_ref, *,
               lv_latent_dim, eps_row, out_rows,
               prior_sigma, inv_two_prior_sigma, lv_init_std, init_scaling):
    """Fused, batch-on-lane forward of LatentVariableNetwork (one batch tile).

    slab_ref  : [SR, TB]  packed activations: rows = xT | yT | ones | epsT | 0-pad
    w1aug_ref : [H, SR]   augmented first layer (w1x^T | w1y^T | b1 | zero cols)
    w2T_ref   : [2L, H]   second layer, mean rows pre-scaled by init_scaling
    b2_ref    : [2L, 1]   second-layer bias, mean rows pre-scaled
    out_ref   : [OR, TB]  packed outputs: rows 0..L-1 = zT, L = logf, L+1 = lognorm
    """
    L = lv_latent_dim
    slab = slab_ref[...]                                             # [SR, TB]

    # Layer 1 as a single augmented matmul.  Columns of w1aug past (F+T+1) are
    # zero, so the eps / padding rows of the slab contribute nothing.
    hT = jnp.dot(w1aug_ref[...], slab, preferred_element_type=jnp.float32)
    hT = jnp.maximum(hT, 0.0)                                        # [H, TB]

    netT = (jnp.dot(w2T_ref[...], hT, preferred_element_type=jnp.float32)
            + b2_ref[...])                                           # [2L, TB]

    z_mu = netT[:L, :]                                               # scaling folded in
    raw = netT[L:, :]                                                # unscaled
    # softplus(x) (beta=1) == logaddexp(x, 0)
    z_std = lv_init_std - jnp.logaddexp(raw, 0.0) * init_scaling
    z_std = jnp.maximum(z_std, 0.001)                                # torch.clamp(min=0.001)

    epsT = slab[eps_row:eps_row + L, :]                              # [L, TB]
    z = z_mu + z_std * epsT                                          # reparameterization

    # Single exact reciprocal (EUP); everything else is VPU multiplies.
    v_z = z_std * z_std
    inv_v = pl.reciprocal(v_z)

    # calc_log_f_hat_z: ((v - ps) / (2*ps*v)) * z^2 + (mu / v) * z, summed over L
    logf = ((v_z - prior_sigma) * inv_two_prior_sigma * inv_v) * z * z \
           + (z_mu * inv_v) * z
    logf_row = jnp.sum(logf, axis=0, keepdims=True)                  # [1, TB]

    # calc_log_normalizer per-row partials: 0.5*log(2*pi*v) + 0.5*mu^2/v
    lognorm = 0.5 * jnp.log(v_z * (2.0 * math.pi)) + 0.5 * (z_mu * z_mu) * inv_v
    lognorm_row = jnp.sum(lognorm, axis=0, keepdims=True)            # [1, TB]

    # Packed output slab (one output ref -> one DMA per step).
    out_ref[0:L, :] = z.astype(out_ref.dtype)
    out_ref[L:L + 1, :] = logf_row.astype(out_ref.dtype)
    out_ref[L + 1:L + 2, :] = lognorm_row.astype(out_ref.dtype)
    if out_rows > L + 2:
        out_ref[L + 2:, :] = jnp.zeros((out_rows - L - 2, z.shape[1]), out_ref.dtype)


def prepare_lv_params(params, num_features, target_dim):
    """One-time weight preparation (hoisted out of the per-call path)."""
    F, T, L = num_features, target_dim, LV_LATENT_DIM
    w1 = jnp.asarray(params["w1"], jnp.float32)                      # [F+T, H]
    b1 = jnp.asarray(params["b1"], jnp.float32).reshape(-1)          # [H]
    w2 = jnp.asarray(params["w2"], jnp.float32)                      # [H, 2L]
    b2 = jnp.asarray(params["b2"], jnp.float32).reshape(-1)          # [2L]
    H = w1.shape[1]

    slab_rows = max(8, _round_up(F + T + 1 + L, 8))
    eps_row = F + T + 1

    # Augmented first layer [H, slab_rows]: cols 0..F+T-1 = w1^T, col F+T = b1, rest 0.
    w1aug = jnp.zeros((H, slab_rows), jnp.float32)
    w1aug = w1aug.at[:, :F + T].set(w1.T)
    w1aug = w1aug.at[:, F + T].set(b1)

    # Second layer with init_scaling folded into the mean rows.
    w2T = w2.T
    w2T = w2T.at[:L, :].multiply(INIT_SCALING)
    b2c = b2.reshape(2 * L, 1)
    b2c = b2c.at[:L, :].multiply(INIT_SCALING)

    return {"w1aug": w1aug, "w2T": w2T, "b2": b2c,
            "num_features": F, "target_dim": T, "hidden": H,
            "slab_rows": slab_rows, "eps_row": eps_row}


def latent_variable_forward(x, y, eps, prep, *, tb=512):
    """Returns (latent_samples [B,L], log_f_hat_z [B], log_normalizer_z [])."""
    B, F = x.shape
    T = y.shape[1]
    L = LV_LATENT_DIM
    assert F == prep["num_features"] and T == prep["target_dim"]
    H = prep["hidden"]
    slab_rows = prep["slab_rows"]
    eps_row = prep["eps_row"]
    out_rows = max(8, _round_up(L + 2, 8))

    # Batch tile: multiple of 256 (fills the 256-wide MXU N-dim on v6e/v7x and
    # amortizes the ~0.35us per-grid-step fixed cost); clamp so a small batch is
    # not over-padded.  On v7x, pass a tb giving >=2 grid blocks for both TCs.
    tb = max(256, min(_round_up(tb, 256), _round_up(B, 256)))
    num_blocks = pl.cdiv(B, tb)
    Bp = num_blocks * tb
    pad = Bp - B

    # One lane-dense activation slab [slab_rows, Bp]: xT | yT | ones | epsT | 0.
    xT = jnp.pad(x.astype(jnp.float32), ((0, pad), (0, 0))).T        # [F, Bp]
    yT = jnp.pad(y.astype(jnp.float32), ((0, pad), (0, 0))).T        # [T, Bp]
    eT = jnp.pad(eps.astype(jnp.float32), ((0, pad), (0, 0))).T      # [L, Bp]
    ones = jnp.ones((1, Bp), jnp.float32)
    zpad = jnp.zeros((slab_rows - (F + T + 1 + L), Bp), jnp.float32)
    slab = jnp.concatenate([xT, yT, ones, eT, zpad], axis=0)         # [slab_rows, Bp]

    kernel = functools.partial(
        _lv_kernel,
        lv_latent_dim=L, eps_row=eps_row, out_rows=out_rows,
        prior_sigma=LV_PRIOR_STD ** 2,
        inv_two_prior_sigma=1.0 / (2.0 * LV_PRIOR_STD ** 2),
        lv_init_std=LV_INIT_STD, init_scaling=INIT_SCALING,
    )

    packed = pl.pallas_call(
        kernel,
        grid=(num_blocks,),
        in_specs=[
            pl.BlockSpec((slab_rows, tb), lambda i: (0, i)),         # activation slab (tiled)
            pl.BlockSpec((H, slab_rows), lambda i: (0, 0)),          # w1aug (resident)
            pl.BlockSpec((2 * L, H), lambda i: (0, 0)),              # w2T   (resident)
            pl.BlockSpec((2 * L, 1), lambda i: (0, 0)),              # b2    (resident)
        ],
        out_specs=pl.BlockSpec((out_rows, tb), lambda i: (0, i)),    # packed outputs
        out_shape=jax.ShapeDtypeStruct((out_rows, Bp), jnp.float32),
        compiler_params=pltpu.CompilerParams(
            dimension_semantics=("parallel",),                       # megacore on v7x
        ),
    )(slab, prep["w1aug"], prep["w2T"], prep["b2"])

    # Padded batch columns are dropped BEFORE any batch reduction (safe padding).
    z = packed[:L, :B].T                                             # [B, L]
    log_f_hat_z = packed[L, :B]                                      # [B]
    log_normalizer_z = jnp.sum(packed[L + 1, :B])                    # scalar
    return z, log_f_hat_z, log_normalizer_z


def _reference_forward(x, y, eps, params):
    """Pure-JAX reference mirroring the PyTorch module."""
    xy = jnp.concatenate([x, y], axis=-1)
    h = jnp.maximum(xy @ params["w1"] + params["b1"], 0.0)
    out = h @ params["w2"] + params["b2"]
    L = LV_LATENT_DIM
    z_mu = out[..., :L] * INIT_SCALING
    z_std = LV_INIT_STD - jax.nn.softplus(out[:, L:]) * INIT_SCALING
    z_std = jnp.clip(z_std, 0.001)
    z = z_mu + z_std * eps
    prior_sigma = LV_PRIOR_STD ** 2
    v_z = z_std ** 2
    logf = ((v_z - prior_sigma) / (2 * prior_sigma * v_z) * z ** 2 + z_mu / v_z * z).sum(-1)
    lognorm = jnp.sum(0.5 * jnp.log(v_z * 2 * math.pi) + 0.5 * z_mu ** 2 / v_z)
    return z, logf, lognorm


if __name__ == "__main__":
    key = jax.random.PRNGKey(0)
    k_x, k_y, k_eps, k_w1, k_b1, k_w2, k_b2 = jax.random.split(key, 7)

    B = 200         # batch (mb_size); not a multiple of 256 on purpose (pad path)
    F_IN = 4        # num_features of x
    T = 1           # target_dim of y
    H = 32          # hidden width of the deterministic lv net
    L = LV_LATENT_DIM
    D = F_IN + T

    x = jax.random.normal(k_x, (B, F_IN), dtype=jnp.float32)
    y = jax.random.normal(k_y, (B, T), dtype=jnp.float32)
    # fix_randomness()-style deterministic reparameterization noise
    eps = jax.random.normal(k_eps, (B, L), dtype=jnp.float32)

    params = {
        "w1": jax.random.normal(k_w1, (D, H), dtype=jnp.float32) * 0.1,
        "b1": jax.random.normal(k_b1, (1, H), dtype=jnp.float32) * 0.1,
        "w2": jax.random.normal(k_w2, (H, 2 * L), dtype=jnp.float32) * 0.1,
        "b2": jax.random.normal(k_b2, (1, 2 * L), dtype=jnp.float32) * 0.1,
    }

    # Weight prep hoisted out of the per-call path (done once).
    prep = prepare_lv_params(params, num_features=F_IN, target_dim=T)
    jax.block_until_ready(prep)

    z, log_f_hat_z, log_normalizer_z = latent_variable_forward(x, y, eps, prep)
    jax.block_until_ready((z, log_f_hat_z, log_normalizer_z))

    z_ref, logf_ref, lognorm_ref = _reference_forward(x, y, eps, params)
    assert z.shape == (B, L) and log_f_hat_z.shape == (B,) and log_normalizer_z.shape == ()
    assert jnp.allclose(z, z_ref, atol=1e-5, rtol=1e-5)
    assert jnp.allclose(log_f_hat_z, logf_ref, atol=1e-5, rtol=1e-5)
    assert jnp.allclose(log_normalizer_z, lognorm_ref, atol=1e-5, rtol=1e-5)

    print("KERNEL_OK")
</pallas_src>

<mosaic_0001>
module attributes {stable_mosaic.version = 11 : i64} {
  func.func @_lv_kernel(%arg0: i32, %arg1: memref<8x256xf32, #tpu.memory_space<vmem>>, %arg2: memref<32x8xf32, #tpu.memory_space<vmem>>, %arg3: memref<2x32xf32, #tpu.memory_space<vmem>>, %arg4: memref<2x1xf32, #tpu.memory_space<vmem>>, %arg5: memref<8x256xf32, #tpu.memory_space<vmem>>) attributes {dimension_semantics = [#tpu.dimension_semantics<parallel>], iteration_bounds = array<i64: 1>, scalar_prefetch = 0 : i64, scratch_operands = 0 : i64, tpu.core_type = #tpu.core_type<tc>, window_params = [{transform_indices = @transform_0, window_bounds = array<i64: 8, 256>}, {pipeline_mode = #tpu.pipeline_mode<synchronous>, transform_indices = @transform_1, window_bounds = array<i64: 32, 8>}, {pipeline_mode = #tpu.pipeline_mode<synchronous>, transform_indices = @transform_2, window_bounds = array<i64: 2, 32>}, {pipeline_mode = #tpu.pipeline_mode<synchronous>, transform_indices = @transform_3, window_bounds = array<i64: 2, 1>}, {transform_indices = @transform_4, window_bounds = array<i64: 8, 256>}]} {
    %c0 = arith.constant 0 : index
    %c0_0 = arith.constant 0 : index
    %0 = vector.load %arg1[%c0, %c0_0] : memref<8x256xf32, #tpu.memory_space<vmem>>, vector<8x256xf32>
    %c0_1 = arith.constant 0 : index
    %c0_2 = arith.constant 0 : index
    %1 = vector.load %arg2[%c0_1, %c0_2] : memref<32x8xf32, #tpu.memory_space<vmem>>, vector<32x8xf32>
    %cst = arith.constant dense<0.000000e+00> : vector<32x256xf32>
    %2 = tpu.matmul %1, %0, %cst {dimension_numbers = #tpu.dot_dimension_numbers<[1], [0], [0], [1], [0, 0, 1, 1], [], []>} : vector<32x8xf32>, vector<8x256xf32>, vector<32x256xf32> -> vector<32x256xf32>
    %cst_3 = arith.constant 0.000000e+00 : f32
    %3 = vector.broadcast %cst_3 : f32 to vector<32x256xf32>
    %4 = arith.maximumf %2, %3 : vector<32x256xf32>
    %c0_4 = arith.constant 0 : index
    %c0_5 = arith.constant 0 : index
    %5 = vector.load %arg3[%c0_4, %c0_5] : memref<2x32xf32, #tpu.memory_space<vmem>>, vector<2x32xf32>
    %cst_6 = arith.constant dense<0.000000e+00> : vector<2x256xf32>
    %6 = tpu.matmul %5, %4, %cst_6 {dimension_numbers = #tpu.dot_dimension_numbers<[1], [0], [0], [1], [0, 0, 1, 1], [], []>} : vector<2x32xf32>, vector<32x256xf32>, vector<2x256xf32> -> vector<2x256xf32>
    %c0_7 = arith.constant 0 : index
    %c0_8 = arith.constant 0 : index
    %7 = vector.load %arg4[%c0_7, %c0_8] : memref<2x1xf32, #tpu.memory_space<vmem>>, vector<2x1xf32>
    %8 = vector.broadcast %7 : vector<2x1xf32> to vector<2x256xf32>
    %9 = arith.addf %6, %8 : vector<2x256xf32>
    %10 = vector.extract_strided_slice %9 {offsets = [0, 0], sizes = [1, 256], strides = [1, 1]} : vector<2x256xf32> to vector<1x256xf32>
    %11 = vector.extract_strided_slice %9 {offsets = [1, 0], sizes = [1, 256], strides = [1, 1]} : vector<2x256xf32> to vector<1x256xf32>
    %cst_9 = arith.constant 0.000000e+00 : f32
    %12 = vector.broadcast %cst_9 : f32 to vector<1x256xf32>
    %13 = arith.maximumf %11, %12 : vector<1x256xf32>
    %14 = vector.broadcast %cst_9 : f32 to vector<1x256xf32>
    %15 = arith.subf %11, %14 : vector<1x256xf32>
    %16 = arith.cmpf one, %15, %15 : vector<1x256xf32>
    %17 = vector.broadcast %cst_9 : f32 to vector<1x256xf32>
    %18 = arith.addf %11, %17 : vector<1x256xf32>
    %19 = math.absf %15 : vector<1x256xf32>
    %cst_10 = arith.constant 0.000000e+00 : f32
    %20 = vector.broadcast %cst_10 : f32 to vector<1x256xf32>
    %21 = arith.subf %20, %19 : vector<1x256xf32>
    %22 = math.exp %21 : vector<1x256xf32>
    %23 = math.log1p %22 : vector<1x256xf32>
    %24 = arith.addf %13, %23 : vector<1x256xf32>
    %25 = arith.select %16, %18, %24 : vector<1x256xi1>, vector<1x256xf32>
    %cst_11 = arith.constant 1.000000e-01 : f32
    %26 = vector.broadcast %cst_11 : f32 to vector<1x256xf32>
    %27 = arith.mulf %25, %26 : vector<1x256xf32>
    %cst_12 = arith.constant 1.000000e+00 : f32
    %28 = vector.broadcast %cst_12 : f32 to vector<1x256xf32>
    %29 = arith.subf %28, %27 : vector<1x256xf32>
    %cst_13 = arith.constant 1.000000e-03 : f32
    %30 = vector.broadcast %cst_13 : f32 to vector<1x256xf32>
    %31 = arith.maximumf %29, %30 : vector<1x256xf32>
    %32 = vector.extract_strided_slice %0 {offsets = [6, 0], sizes = [1, 256], strides = [1, 1]} : vector<8x256xf32> to vector<1x256xf32>
    %33 = arith.mulf %31, %32 : vector<1x256xf32>
    %34 = arith.addf %10, %33 : vector<1x256xf32>
    %35 = arith.mulf %31, %31 : vector<1x256xf32>
    %36 = tpu.reciprocal %35 : vector<1x256xf32> -> vector<1x256xf32>
    %cst_14 = arith.constant 2.500000e+01 : f32
    %37 = vector.broadcast %cst_14 : f32 to vector<1x256xf32>
    %38 = arith.subf %35, %37 : vector<1x256xf32>
    %cst_15 = arith.constant 2.000000e-02 : f32
    %39 = vector.broadcast %cst_15 : f32 to vector<1x256xf32>
    %40 = arith.mulf %38, %39 : vector<1x256xf32>
    %41 = arith.mulf %40, %36 : vector<1x256xf32>
    %42 = arith.mulf %41, %34 : vector<1x256xf32>
    %43 = arith.mulf %42, %34 : vector<1x256xf32>
    %44 = arith.mulf %10, %36 : vector<1x256xf32>
    %45 = arith.mulf %44, %34 : vector<1x256xf32>
    %46 = arith.addf %43, %45 : vector<1x256xf32>
    %cst_16 = arith.constant dense<0.000000e+00> : vector<256xf32>
    %47 = vector.multi_reduction <add>, %46, %cst_16 [0] : vector<1x256xf32> to vector<256xf32>
    %48 = vector.shape_cast %47 : vector<256xf32> to vector<1x256xf32>
    %cst_17 = arith.constant 6.28318548 : f32
    %49 = vector.broadcast %cst_17 : f32 to vector<1x256xf32>
    %50 = arith.mulf %35, %49 : vector<1x256xf32>
    %51 = math.log %50 : vector<1x256xf32>
    %cst_18 = arith.constant 5.000000e-01 : f32
    %52 = vector.broadcast %cst_18 : f32 to vector<1x256xf32>
    %53 = arith.mulf %52, %51 : vector<1x256xf32>
    %54 = arith.mulf %10, %10 : vector<1x256xf32>
    %cst_19 = arith.constant 5.000000e-01 : f32
    %55 = vector.broadcast %cst_19 : f32 to vector<1x256xf32>
    %56 = arith.mulf %55, %54 : vector<1x256xf32>
    %57 = arith.mulf %56, %36 : vector<1x256xf32>
    %58 = arith.addf %53, %57 : vector<1x256xf32>
    %cst_20 = arith.constant dense<0.000000e+00> : vector<256xf32>
    %59 = vector.multi_reduction <add>, %58, %cst_20 [0] : vector<1x256xf32> to vector<256xf32>
    %60 = vector.shape_cast %59 : vector<256xf32> to vector<1x256xf32>
    %c0_21 = arith.constant 0 : index
    %c0_22 = arith.constant 0 : index
    %61 = vector.load %arg5[%c0_21, %c0_22] : memref<8x256xf32, #tpu.memory_space<vmem>>, vector<1x256xf32>
    tpu.vector_store %arg5[%c0_21, %c0_22], %34 {strides = array<i32>} : memref<8x256xf32, #tpu.memory_space<vmem>>, vector<1x256xf32>,
    %c1 = arith.constant 1 : index
    %c0_23 = arith.constant 0 : index
    %62 = vector.load %arg5[%c1, %c0_23] : memref<8x256xf32, #tpu.memory_space<vmem>>, vector<1x256xf32>
    tpu.vector_store %arg5[%c1, %c0_23], %48 {strides = array<i32>} : memref<8x256xf32, #tpu.memory_space<vmem>>, vector<1x256xf32>,
    %c2 = arith.constant 2 : index
    %c0_24 = arith.constant 0 : index
    %63 = vector.load %arg5[%c2, %c0_24] : memref<8x256xf32, #tpu.memory_space<vmem>>, vector<1x256xf32>
    tpu.vector_store %arg5[%c2, %c0_24], %60 {strides = array<i32>} : memref<8x256xf32, #tpu.memory_space<vmem>>, vector<1x256xf32>,
    %cst_25 = arith.constant 0.000000e+00 : f32
    %64 = vector.broadcast %cst_25 : f32 to vector<5x256xf32>
    %c3 = arith.constant 3 : index
    %c0_26 = arith.constant 0 : index
    %65 = vector.load %arg5[%c3, %c0_26] : memref<8x256xf32, #tpu.memory_space<vmem>>, vector<5x256xf32>
    tpu.vector_store %arg5[%c3, %c0_26], %64 {strides = array<i32>} : memref<8x256xf32, #tpu.memory_space<vmem>>, vector<5x256xf32>,
    return
  }
  func.func @transform_0(%arg0: i32) -> (i32, i32) {
    %c0_i32 = arith.constant 0 : i32
    %c0_i32_0 = arith.constant 0 : i32
    return %c0_i32, %arg0 : i32, i32
  }
  func.func @transform_1(%arg0: i32) -> (i32, i32) {
    %c0_i32 = arith.constant 0 : i32
    %c0_i32_0 = arith.constant 0 : i32
    %c0_i32_1 = arith.constant 0 : i32
    return %c0_i32, %c0_i32_0 : i32, i32
  }
  func.func @transform_2(%arg0: i32) -> (i32, i32) {
    %c0_i32 = arith.constant 0 : i32
    %c0_i32_0 = arith.constant 0 : i32
    %c0_i32_1 = arith.constant 0 : i32
    return %c0_i32, %c0_i32_0 : i32, i32
  }
  func.func @transform_3(%arg0: i32) -> (i32, i32) {
    %c0_i32 = arith.constant 0 : i32
    %c0_i32_0 = arith.constant 0 : i32
    %c0_i32_1 = arith.constant 0 : i32
    return %c0_i32, %c0_i32_0 : i32, i32
  }
  func.func @transform_4(%arg0: i32) -> (i32, i32) {
    %c0_i32 = arith.constant 0 : i32
    %c0_i32_0 = arith.constant 0 : i32
    return %c0_i32, %arg0 : i32, i32
  }
}

</mosaic_0001>

<bundles_post_ra>
// kernel: tpu_custom_call.1
= control target key start
LH: loop header
LB: loop body
LE: loop exit
PB: predicated region body
PF: predicated region fallthrough
CT: control target
= control target key end

     0   :  { %vm24_vm0 = vcmask 64512   ;;  %v480_v3 = vmov 0.0   ;;  %s589_s0 = inlined_call_operand.vmem [shape: f32[8,256], index: 0, kind: input, shape index: {}]   ;;  %s590_s1 = inlined_call_operand.vmem [shape: f32[32,8], index: 1, kind: input, shape index: {}]   ;;  %s591_s2 = inlined_call_operand.vmem [shape: f32[2,32], index: 2, kind: input, shape index: {}]   ;;  %s592_s3 = inlined_call_operand.vmem [shape: f32[2,1], index: 3, kind: input, shape index: {}]   ;;  %s593_s4 = inlined_call_operand.hbm [shape: f32[8,256], index: 4, kind: output, shape index: {}]  }
   0x1   :  { %v512_v0 = vld [vmem:[%s589_s0 + $0x8] sm:$0xff]  ;;  %v517_v1 = vld [vmem:[%s589_s0] sm:$0xff]  ;;  %101 = vmatprep.mubr.f32.mxu0 %v480_v3  ;;  %404 = vst [vmem:[#allocation2] sm:$0xf8] %v480_v3  ;;  %405 = vst [vmem:[#allocation2 + $0x8] sm:$0xf8] %v480_v3  ;;  %209 = vmatprep.mubr.f32.mxu1 %v480_v3 }
   0x2   :  { %v20_v2 = vld [vmem:[%s590_s1] sm:$0xff]  ;;  %37 = vmatprep.subr.mxu0 %v512_v0 }
   0x3   :  { %38 = vmatpush1.msra.mxu0 %v517_v1 }
   0x4   :  { %9 = vsyncpa [#allocation3], 0  ;;  %420 = vmatmul.mubr.msk.f32.vlgmr.msra.gmra.mrb[0].mxu0 %vm24_vm0, %v20_v2  ;;  %v21_v4 = vld [vmem:[%s590_s1 + $0x8] sm:$0xff]  ;;  %v22_v5 = vld [vmem:[%s590_s1 + $0x10] sm:$0xff]  ;;  %v481_v8 = vmov 0   ;;  %vm141_vm1 = vcmask 261120  }
   0x5   :  { %107 = vmatprep.mubr.f32.mxu0 %v480_v3  ;;  %v23_v6 = vld [vmem:[%s590_s1 + $0x18] sm:$0xff]  ;;  %v135_v7 = vld [vmem:[%s592_s3] sm:$0x3]  ;;  %439 = vset.pattern.permute.xlu0 %v481_v8 }
   0x6   :  { %138 = vperm.xlu0 %439, %v135_v7   ;;  %v134_v29 = vld [vmem:[%s591_s2] sm:$0x3]  ;;  %v261_v7 = vrot.slane %v512_v0, 5  ;;  %s483_s2 = smov [#allocation2]  }
   0x7   :  { %s412_s28 = sshll.u32 %s483_s2, 4  ;;  %s413_s28 = int_to_ptr.vmem [resolvable:$true] %s412_s28 }
   0x8   :  { %421 = vmatmul.mubr.msk.f32.gmra.mrb[2].mxu0 %vm24_vm0, %v21_v4  ;;  %s456_s29 = scalar_lea.vmem %s413_s28, 256  ;;  %p461_p1 = scmp.lt.s32.totalorder %s413_s28, %s413_s28 }
   0x9   :  { %113 = vmatprep.mubr.f32.mxu0 %v480_v3  ;;  %p457_p0 = scmp.ne.s32.totalorder %s413_s28, %s456_s29  ;;  %p462_p2 = scmp.lt.s32.totalorder %s456_s29, %s456_s29 }
   0xb   :  { %p463_p3 = por %p462_p2, %p461_p1 }
   0xc   :  { %422 = vmatmul.mubr.msk.f32.gmra.mrb[4].mxu0 %vm24_vm0, %v22_v5  ;;  %v260_v5 = vrot.slane %v517_v1, 5 }
   0xd   :  { %119 = vmatprep.mubr.f32.mxu0 %v480_v3  ;;  %p464_p4 = pnand %p463_p3, %p457_p0 }
  0x10   :  { %423 = vmatmul.mubr.msk.f32.gmra.mrb[6].mxu0 %vm24_vm0, %v23_v6 }
  0x85   :  { %v139_v30 = vpop.permute.xlu0 %138 }
  0xd7   :  { %v103_v9 = vpop.f32.mrb[0].mxu0 }
  0xd8   :  { %v105_v10 = vpop.f32.mrb[1].mxu0  ;;  %v126_v12 = vmax.f32 %v103_v9, 0.0  ;;  %v482_v9 = vmov 1966171168  }
  0xd9   :  { %v127_v15 = vmax.f32 %v105_v10, 0.0  ;;  %v340_v10 = vunpack.c.l.s4 %v482_v9 }
  0xdb   :  { %v109_v11 = vpop.f32.mrb[2].mxu0 }
  0xdc   :  { %v128_v13 = vmax.f32 %v109_v11, 0.0  ;;  %v111_v14 = vpop.f32.mrb[3].mxu0  ;;  %v342_v11 = vlaneseq }
  0xdd   :  { %v129_v16 = vmax.f32 %v111_v14, 0.0 }
  0xde   :  { %v429_v17 = vpack.c.bf16 %v128_v13, %v126_v12  ;;  %vm565_vm6 = vcmp.lt.s32.totalorder %v342_v11, 256 }
  0xdf   :  { %v115_v18 = vpop.f32.mrb[4].mxu0  ;;  %v427_v19 = vpack.c.bf16 %v129_v16, %v127_v15 }
  0xe0   :  { %v117_v20 = vpop.f32.mrb[5].mxu0  ;;  %v130_v22 = vmax.f32 %v115_v18, 0.0  ;;  %v341_v18 = vunpack.c.0.s8 %v340_v10 }
  0xe1   :  { %428 = vmatprep.subr.bf16.mxu1 %v427_v19  ;;  %v131_v25 = vmax.f32 %v117_v20, 0.0  ;;  %v343_v19 = vshrl.u32 %v342_v11, 7 }
  0xe2   :  { %430 = vmatpush1.bf16.msra.mxu1 %v429_v17 }
  0xe3   :  { %v121_v21 = vpop.f32.mrb[6].mxu0 }
  0xe4   :  { %v132_v23 = vmax.f32 %v121_v21, 0.0  ;;  %v123_v24 = vpop.f32.mrb[7].mxu0 }
  0xe5   :  { %v133_v26 = vmax.f32 %v123_v24, 0.0  ;;  %v344_v24 = vsub.s32 %v341_v18, %v343_v19 }
  0xe6   :  { %v433_v27 = vpack.c.bf16 %v132_v23, %v130_v22 }
  0xe7   :  { %v431_v28 = vpack.c.bf16 %v133_v26, %v131_v25 }
  0xe9   :  { %432 = vmatprep.subr.bf16.mxu1 %v431_v28 }
  0xea   :  { %434 = vmatpush1.bf16.msra.mxu1 %v433_v27 }
  0xed   :  { %424 = vmatmul.mubr.msk.f32.vlgmr.msra.gmra.mrb[0].mxu1 %vm141_vm1, %v134_v29 }
 0x1c0   :  { %v211_v31 = vpop.f32.mrb[0].mxu1 }
 0x1c1   :  { %v543_v32 = vadd.f32 %v211_v31, %v139_v30  ;;  %v213_v33 = vpop.f32.mrb[1].mxu1 }
 0x1c2   :  { %v545_v34 = vadd.f32 %v213_v33, %v139_v30 }
 0x1c3   :  { %v222_v35 = vand.u32 2147483647, %v543_v32  ;;  %v216_v55 = vmax.f32 %v543_v32, 0.0  ;;  %vm218_vm4 = vcmp.ne.f32.partialorder %v543_v32, %v543_v32  ;;  %v322_v28 = vmul.f32 %v543_v32, %v543_v32 }
 0x1c4   :  { %v223_v36 = vand.u32 2147483647, %v545_v34  ;;  %v217_v59 = vmax.f32 %v545_v34, 0.0  ;;  %vm219_vm5 = vcmp.ne.f32.partialorder %v545_v34, %v545_v34  ;;  %v323_v30 = vmul.f32 %v545_v34, %v545_v34 }
 0x1c5   :  { %v224_v37 = vsub.f32 0.0, %v222_v35 }
 0x1c6   :  { %v225_v38 = vsub.f32 0.0, %v223_v36 }
 0x1c7   :  { %v226_v39 = vmul.f32 1.442695, %v224_v37 }
 0x1c8   :  { %v228_v40 = vmul.f32 1.442695, %v225_v38 }
 0x1c9   :  { %440 = vpow2.f32 %v226_v39 }
 0x1ca   :  { %442 = vpow2.f32 %v228_v40 }
 0x1d3   :  { %v441_v41 = vpop.eup %440 }
 0x1d4   :  { %v443_v42 = vpop.eup %442  ;;  %v230_v43 = vadd.f32 1.0, %v441_v41  ;;  %v233_v45 = vmul.f32 -0.5, %v441_v41  ;;  %v236_v48 = vand.u32 2147483647, %v441_v41 }
 0x1d5   :  { %v239_v44 = vadd.f32 1.0, %v443_v42  ;;  %v242_v46 = vmul.f32 -0.5, %v443_v42  ;;  %v245_v50 = vand.u32 2147483647, %v443_v42 }
 0x1d6   :  { %444 = vlog2.f32 %v230_v43  ;;  %v234_v47 = vadd.f32 1.0, %v233_v45  ;;  %vm237_vm2 = vcmp.lt.f32.partialorder %v236_v48, 0.0004427343 }
 0x1d7   :  { %446 = vlog2.f32 %v239_v44  ;;  %v243_v49 = vadd.f32 1.0, %v242_v46  ;;  %vm246_vm3 = vcmp.lt.f32.partialorder %v245_v50, 0.0004427343 }
 0x1d8   :  { %v235_v54 = vmul.f32 %v441_v41, %v234_v47  ;;  %v325_v47 = vmul.f32 0.5, %v323_v30 }
 0x1d9   :  { %v244_v57 = vmul.f32 %v443_v42, %v243_v49  ;;  %v324_v42 = vmul.f32 0.5, %v322_v28 }
 0x1e0   :  { %v445_v51 = vpop.eup %444 }
 0x1e1   :  { %v447_v52 = vpop.eup %446  ;;  %v232_v53 = vmul.f32 0.6931472, %v445_v51 }
 0x1e2   :  { %v241_v56 = vmul.f32 0.6931472, %v447_v52 }
 0x1e3   :  { %v238_v58 = vsel %vm237_vm2, %v235_v54, %v232_v53 }
 0x1e4   :  { %v248_v60 = vadd.f32 %v238_v58, %v216_v55  ;;  %v247_v61 = vsel %vm246_vm3, %v244_v57, %v241_v56 }
 0x1e5   :  { %v249_v62 = vadd.f32 %v247_v61, %v217_v59 }
 0x1e6   :  { %v250_v63 = vsel %vm218_vm4, %v543_v32, %v248_v60 }
 0x1e7   :  { %v252_v2 = vmul.f32 0.1, %v250_v63  ;;  %v251_v3 = vsel %vm219_vm5, %v545_v34, %v249_v62 }
 0x1e8   :  { %v253_v4 = vmul.f32 0.1, %v251_v3 }
 0x1e9   :  { %v254_v6 = vsub.f32 1.0, %v252_v2 }
 0x1ea   :  { %v255_v8 = vsub.f32 1.0, %v253_v4 }
 0x1eb   :  { %v256_v12 = vmax.f32 %v254_v6, 0.001 }
 0x1ec   :  { %v257_v13 = vmax.f32 %v255_v8, 0.001 }
 0x1ed   :  { %v274_v14 = vmul.f32 %v256_v12, %v256_v12  ;;  %v264_v15 = vmul.f32 %v260_v5, %v256_v12 }
 0x1ee   :  { %v275_v16 = vmul.f32 %v257_v13, %v257_v13  ;;  %v265_v17 = vmul.f32 %v261_v7, %v257_v13 }
 0x1ef   :  { %448 = vrcp.f32 %v274_v14  ;;  %v268_v20 = vrot.slane %v264_v15, 1  ;;  %v314_v21 = vmul.f32 6.2831855, %v274_v14  ;;  %v425_v25 = vadd.f32 -25.0, %v274_v14 }
 0x1f0   :  { %450 = vrcp.f32 %v275_v16  ;;  %v269_v1 = vrot.slane %v265_v17, 1  ;;  %v315_v22 = vmul.f32 6.2831855, %v275_v16  ;;  %v426_v27 = vadd.f32 -25.0, %v275_v16 }
 0x1f1   :  { %v272_v0 = vadd.f32 %v268_v20, %v543_v32  ;;  %452 = vlog2.f32 %v314_v21  ;;  %v280_v33 = vmul.f32 0.02, %v425_v25 }
 0x1f2   :  { %v273_v23 = vadd.f32 %v269_v1, %v545_v34  ;;  %454 = vlog2.f32 %v315_v22  ;;  %v281_v37 = vmul.f32 0.02, %v426_v27 }
 0x1f3   :  { %v286_v40 = vrot.slane %v272_v0, 7 }
 0x1f4   :  { %v338_v26 = vcombine.low %v272_v0, %v273_v23  ;;  %v287_v45 = vrot.slane %v273_v23, 7 }
 0x1f6   :  { %v345_v29 = vrot.slane %v338_v26, %v344_v24 }
 0x1f8   :  { %v352_v35 = vrot.slane %v345_v29, %v344_v24 }
 0x1f9   :  { %v449_v36 = vpop.eup %448 }
 0x1fa   :  { %v451_v38 = vpop.eup %450  ;;  %v282_v39 = vmul.f32 %v449_v36, %v280_v33  ;;  %v296_v41 = vrot.slane %v449_v36, 1  ;;  %358 = vst.msk [vmem:[#allocation2] ss:$8 sm:$0x3] %vm565_vm6, %v352_v35 }
 0x1fb   :  { %v453_v43 = vpop.eup %452  ;;  %v283_v44 = vmul.f32 %v451_v38, %v281_v37  ;;  %v297_v46 = vrot.slane %v451_v38, 1 }
 0x1fc   :  { %v455_v48 = vpop.eup %454  ;;  %v290_v49 = vmul.f32 %v286_v40, %v282_v39  ;;  %v300_v50 = vmul.f32 %v296_v41, %v543_v32  ;;  %v317_v51 = vmul.f32 0.6931472, %v453_v43  ;;  %v326_v52 = vmul.f32 %v324_v42, %v296_v41 }
 0x1fd   :  { %v291_v53 = vmul.f32 %v287_v45, %v283_v44  ;;  %v301_v54 = vmul.f32 %v297_v46, %v545_v34  ;;  %v319_v55 = vmul.f32 0.6931472, %v455_v48  ;;  %v327_v56 = vmul.f32 %v325_v47, %v297_v46 }
 0x1fe   :  { %v292_v57 = vmul.f32 %v290_v49, %v286_v40  ;;  %v302_v58 = vmul.f32 %v300_v50, %v272_v0  ;;  %v320_v59 = vmul.f32 0.5, %v317_v51  ;;  %v330_v60 = vrot.slane %v326_v52, 7 }
 0x1ff   :  { %v293_v61 = vmul.f32 %v291_v53, %v287_v45  ;;  %v303_v62 = vmul.f32 %v301_v54, %v273_v23  ;;  %v321_v63 = vmul.f32 0.5, %v319_v55  ;;  %v331_v2 = vrot.slane %v327_v56, 7 }
 0x200   :  { %v306_v3 = vrot.slane %v302_v58, 7  ;;  %v334_v4 = vadd.f32 %v330_v60, %v320_v59 }
 0x201   :  { %v307_v5 = vrot.slane %v303_v62, 7  ;;  %v335_v6 = vadd.f32 %v331_v2, %v321_v63 }
 0x202   :  { %v310_v32 = vadd.f32 %v306_v3, %v292_v57 }
 0x203   :  { %v311_v7 = vadd.f32 %v307_v5, %v293_v61  ;;  %v384_v8 = vcombine.low %v334_v4, %v335_v6 }
 0x205   :  { %v362_v9 = vcombine.low %v310_v32, %v311_v7  ;;  %v391_v10 = vrot.slane %v384_v8, %v344_v24 }
 0x207   :  { %v369_v34 = vrot.slane %v362_v9, %v344_v24  ;;  %v392_v11 = vcombine.high %v391_v10, %v391_v10 }
 0x209   :  { %v370_v12 = vcombine.high %v369_v34, %v369_v34  ;;  %v399_v13 = vrot.slane %v392_v11, %v344_v24 }
 0x20b   :  { %v377_v14 = vrot.slane %v370_v12, %v344_v24  ;;  %402 = vst.msk [vmem:[#allocation2 + $0x2] ss:$8 sm:$0x3] %vm565_vm6, %v399_v13 }
 0x20d   :  { %380 = vst.msk [vmem:[#allocation2 + $0x1] ss:$8 sm:$0x3] %vm565_vm6, %v377_v14 }
 0x20e   :  { %467 = shalt.err (!%p464_p4)
}
 0x20f   :  { %s468_s6 = scalar_lea.hbm %s593_s4, 256 }
 0x210   :  { %p469_p5 = scmp.ne.s32.totalorder %s593_s4, %s468_s6  ;;  %p472_p6 = scmp.lt.u32.totalorder %s468_s6, %s593_s4 }
 0x212   :  { %p474_p7 = pnand %p472_p6, %p469_p5 }
 0x214   :  { %477 = shalt.err (!%p474_p7)
}
 0x215   :  { %415 = dma.vmem_to_hbm [thread:$0]  %s413_s28, 256, %s593_s4, [#allocation3]  }
 0x216   :  { %478 = dma.done.wait [#allocation3], 256  }
 0x217   :  { %479 = vsyncadd [#allocation3], 4294967040 }
 0x218   :  { %419 = vsyncpa [#allocation3], 1 }

</bundles_post_ra>
